<compile_context>
chip_gen: v7x
topology: tpu7x:2x2x1
jax: 0.10.0
libtpu: 0.0.40
codegen_flags: <defaults>
</compile_context>

<pallas_src>
import functools
import math

import jax
import jax.numpy as jnp
from jax.experimental import pallas as pl
from jax.experimental.pallas import tpu as pltpu

D = 256  # time_embedding_dim / feature dim


def _round_up(x, m):
    return ((x + m - 1) // m) * m


def _leaky_relu(x, slope=0.01):
    # nn.LeakyReLU default negative_slope = 0.01; max form valid for slope in (0,1).
    return jnp.maximum(x, slope * x)


def diffusion_net_sum_kernel(
    noisy_ref, cond_ref, temb_ref,
    # time_embedding MLP (t2/t3 pre-fused): L1+b, LReLU, L23+b, LReLU, L4+b
    tw1_ref, tb1_ref, tw23_ref, tb23_ref, tw4_ref, tb4_ref,
    # fusion MLP: L+b, LReLU, L+b, LReLU, L (no bias)
    fw1_ref, fb1_ref, fw2_ref, fb2_ref, fw3_ref,
    out_ref,
):
    def mm(x, w_ref):
        # bf16 MXU inputs (no-op cast if already bf16), f32 accumulation.
        return jnp.dot(
            x.astype(jnp.bfloat16), w_ref[...],
            preferred_element_type=jnp.float32,
        )

    # ---- time_embedding MLP (all VPU math in f32) ----
    h = _leaky_relu(mm(temb_ref[...], tw1_ref) + tb1_ref[...])
    h = mm(h, tw23_ref) + tb23_ref[...]          # fused Linear(t2) o Linear(t3)
    h = _leaky_relu(h)
    h = mm(h, tw4_ref) + tb4_ref[...]

    # ---- fuse: noisy_feat + cond_feat + time_embedding(t_emb), in f32 ----
    x = noisy_ref[...].astype(jnp.float32) + cond_ref[...].astype(jnp.float32) + h

    # ---- fusion MLP ----
    x = _leaky_relu(mm(x, fw1_ref) + fb1_ref[...])
    x = _leaky_relu(mm(x, fw2_ref) + fb2_ref[...])
    out_ref[...] = mm(x, fw3_ref).astype(out_ref.dtype)


def timestep_embedding(timesteps, dim, max_period=10000):
    """JAX port of the sinusoidal embedding (glue, computed outside the kernel)."""
    half = dim // 2
    freqs = jnp.exp(
        -math.log(max_period) * jnp.arange(half, dtype=jnp.float32) / half
    )
    args = timesteps[:, None].astype(jnp.float32) * freqs[None, :]
    emb = jnp.concatenate([jnp.cos(args), jnp.sin(args)], axis=-1)
    if dim % 2:
        emb = jnp.concatenate([emb, jnp.zeros_like(emb[:, :1])], axis=-1)
    return emb


def init_params(key):
    """Deterministic PyTorch-Linear-like init; weights stored [in, out]."""
    params = {}

    def linear(key, name, fan_in, fan_out, bias=True):
        kw, kb = jax.random.split(key)
        bound = 1.0 / math.sqrt(fan_in)
        params[name + "_w"] = jax.random.uniform(
            kw, (fan_in, fan_out), jnp.float32, -bound, bound
        )
        if bias:
            params[name + "_b"] = jax.random.uniform(
                kb, (1, fan_out), jnp.float32, -bound, bound
            )

    keys = jax.random.split(key, 7)
    # time_embedding: 4 Linear(256,256) layers, all with bias
    linear(keys[0], "t1", D, D)
    linear(keys[1], "t2", D, D)
    linear(keys[2], "t3", D, D)
    linear(keys[3], "t4", D, D)
    # fusion: Linear(b), Linear(b), Linear(no bias)
    linear(keys[4], "f1", D, D)
    linear(keys[5], "f2", D, D)
    linear(keys[6], "f3", D, D, bias=False)
    return params


def prepare_kernel_params(params):
    """One-time prep: fuse t2/t3 (in f32) and cast weights to bf16; biases stay f32."""
    w23 = params["t2_w"] @ params["t3_w"]
    b23 = params["t2_b"] @ params["t3_w"] + params["t3_b"]
    to_bf16 = lambda w: w.astype(jnp.bfloat16)
    return {
        "t1_w": to_bf16(params["t1_w"]), "t1_b": params["t1_b"],
        "t23_w": to_bf16(w23),           "t23_b": b23,
        "t4_w": to_bf16(params["t4_w"]), "t4_b": params["t4_b"],
        "f1_w": to_bf16(params["f1_w"]), "f1_b": params["f1_b"],
        "f2_w": to_bf16(params["f2_w"]), "f2_b": params["f2_b"],
        "f3_w": to_bf16(params["f3_w"]),
    }


def diffusion_net_sum(noisy_feat, cond_feat, t, kparams, *, tb=2048):
    """Forward pass. `kparams` comes from prepare_kernel_params().

    Output is bf16 (bandwidth): downstream consumers see ~3 decimal digits.
    """
    B = noisy_feat.shape[0]
    temb = timestep_embedding(t, D)

    # Batch tile: multiple of 16 rows (bf16 packs 2 rows per sublane), no
    # larger than the padded batch.
    b16 = _round_up(B, 16)
    tb = max(16, min(_round_up(tb, 16), b16))
    # v7x has 2 TensorCores: guarantee >= 2 (parallel) grid steps whenever the
    # batch is large enough so both cores get work.  v5e/v6e are single-TC.
    if b16 >= 32:
        tb = min(tb, _round_up((b16 + 1) // 2, 16))
    b_pad = _round_up(B, tb)

    def to_stream(x):
        # bf16 at the HBM boundary; pad only when needed.  Under jit the cast
        # and pad fuse into a single pass (and are no-ops if the producer
        # already emits correctly-sized bf16).
        x = x.astype(jnp.bfloat16)
        if b_pad != B:
            x = jnp.pad(x, ((0, b_pad - B), (0, 0)))
        return x

    noisy = to_stream(noisy_feat)
    cond = to_stream(cond_feat)
    temb = to_stream(temb)

    grid = (b_pad // tb,)
    act_spec = pl.BlockSpec((tb, D), lambda i: (i, 0))   # streamed per batch tile
    # Constant index_maps: weights/biases are DMA'd once and stay VMEM-resident.
    w_spec = pl.BlockSpec((D, D), lambda i: (0, 0))
    b_spec = pl.BlockSpec((1, D), lambda i: (0, 0))

    flops = 2 * b_pad * D * D * 6                        # 6 matmuls after t2/t3 fusion
    bytes_accessed = (
        4 * b_pad * D * 2        # 3 bf16 activation inputs + 1 bf16 output
        + 6 * D * D * 2          # bf16 weights (fetched once)
        + 5 * D * 4              # f32 biases
    )

    out = pl.pallas_call(
        diffusion_net_sum_kernel,
        out_shape=jax.ShapeDtypeStruct((b_pad, D), jnp.bfloat16),
        grid=grid,
        in_specs=[
            act_spec, act_spec, act_spec,
            w_spec, b_spec, w_spec, b_spec, w_spec, b_spec,
            w_spec, b_spec, w_spec, b_spec, w_spec,
        ],
        out_specs=act_spec,
        compiler_params=pltpu.CompilerParams(
            dimension_semantics=("parallel",),
            vmem_limit_bytes=48 * 1024 * 1024,
        ),
        cost_estimate=pl.CostEstimate(
            flops=flops, transcendentals=0, bytes_accessed=bytes_accessed
        ),
    )(
        noisy, cond, temb,
        kparams["t1_w"], kparams["t1_b"],
        kparams["t23_w"], kparams["t23_b"],
        kparams["t4_w"], kparams["t4_b"],
        kparams["f1_w"], kparams["f1_b"],
        kparams["f2_w"], kparams["f2_b"],
        kparams["f3_w"],
    )
    return out[:B]


def _reference(noisy_feat, cond_feat, t, params):
    """Pure-JAX f32 reference matching the original PyTorch module exactly."""
    def lrelu(x):
        return jnp.where(x >= 0, x, 0.01 * x)

    temb = timestep_embedding(t, D)
    h = lrelu(temb @ params["t1_w"] + params["t1_b"])
    h = h @ params["t2_w"] + params["t2_b"]
    h = lrelu(h @ params["t3_w"] + params["t3_b"])
    h = h @ params["t4_w"] + params["t4_b"]
    x = noisy_feat + cond_feat + h
    x = lrelu(x @ params["f1_w"] + params["f1_b"])
    x = lrelu(x @ params["f2_w"] + params["f2_b"])
    return x @ params["f3_w"]


if __name__ == "__main__":
    # Small test: B=40 with tb=16 exercises the multi-step batch grid (3 steps),
    # the v7x >=2-step cap and the padding path (40 -> 48).  Production default
    # is tb=2048 with the automatic >=2-step cap.
    B = 40
    key = jax.random.PRNGKey(0)
    k_noisy, k_cond, k_t, k_params = jax.random.split(key, 4)

    noisy_feat = jax.random.normal(k_noisy, (B, D), jnp.float32)
    cond_feat = jax.random.normal(k_cond, (B, D), jnp.float32)
    t = jax.random.randint(k_t, (B,), 0, 1000).astype(jnp.float32)

    params = init_params(k_params)
    kparams = prepare_kernel_params(params)

    fwd = jax.jit(functools.partial(diffusion_net_sum, tb=16))
    out = jax.block_until_ready(fwd(noisy_feat, cond_feat, t, kparams))

    ref = _reference(noisy_feat, cond_feat, t, params)
    assert out.shape == (B, D)
    # bf16 streams/output + fused bf16 t2/t3 weights => relative-L2 bound.
    rel_err = jnp.linalg.norm(out.astype(jnp.float32) - ref) / (
        jnp.linalg.norm(ref) + 1e-12
    )
    assert float(rel_err) < 3e-2, f"mismatch vs reference: rel_err={float(rel_err)}"

    print("KERNEL_OK")
</pallas_src>

<mosaic_0001>
module attributes {stable_mosaic.version = 11 : i64} {
  func.func @diffusion_net_sum_kernel(%arg0: i32, %arg1: memref<16x256xbf16, #tpu.memory_space<vmem>>, %arg2: memref<16x256xbf16, #tpu.memory_space<vmem>>, %arg3: memref<16x256xbf16, #tpu.memory_space<vmem>>, %arg4: memref<256x256xbf16, #tpu.memory_space<vmem>>, %arg5: memref<1x256xf32, #tpu.memory_space<vmem>>, %arg6: memref<256x256xbf16, #tpu.memory_space<vmem>>, %arg7: memref<1x256xf32, #tpu.memory_space<vmem>>, %arg8: memref<256x256xbf16, #tpu.memory_space<vmem>>, %arg9: memref<1x256xf32, #tpu.memory_space<vmem>>, %arg10: memref<256x256xbf16, #tpu.memory_space<vmem>>, %arg11: memref<1x256xf32, #tpu.memory_space<vmem>>, %arg12: memref<256x256xbf16, #tpu.memory_space<vmem>>, %arg13: memref<1x256xf32, #tpu.memory_space<vmem>>, %arg14: memref<256x256xbf16, #tpu.memory_space<vmem>>, %arg15: memref<16x256xbf16, #tpu.memory_space<vmem>>) attributes {dimension_semantics = [#tpu.dimension_semantics<parallel>], iteration_bounds = array<i64: 3>, scalar_prefetch = 0 : i64, scratch_operands = 0 : i64, tpu.core_type = #tpu.core_type<tc>, window_params = [{transform_indices = @transform_0, window_bounds = array<i64: 16, 256>}, {transform_indices = @transform_1, window_bounds = array<i64: 16, 256>}, {transform_indices = @transform_2, window_bounds = array<i64: 16, 256>}, {pipeline_mode = #tpu.pipeline_mode<synchronous>, transform_indices = @transform_3, window_bounds = array<i64: 256, 256>}, {pipeline_mode = #tpu.pipeline_mode<synchronous>, transform_indices = @transform_4, window_bounds = array<i64: 1, 256>}, {pipeline_mode = #tpu.pipeline_mode<synchronous>, transform_indices = @transform_5, window_bounds = array<i64: 256, 256>}, {pipeline_mode = #tpu.pipeline_mode<synchronous>, transform_indices = @transform_6, window_bounds = array<i64: 1, 256>}, {pipeline_mode = #tpu.pipeline_mode<synchronous>, transform_indices = @transform_7, window_bounds = array<i64: 256, 256>}, {pipeline_mode = #tpu.pipeline_mode<synchronous>, transform_indices = @transform_8, window_bounds = array<i64: 1, 256>}, {pipeline_mode = #tpu.pipeline_mode<synchronous>, transform_indices = @transform_9, window_bounds = array<i64: 256, 256>}, {pipeline_mode = #tpu.pipeline_mode<synchronous>, transform_indices = @transform_10, window_bounds = array<i64: 1, 256>}, {pipeline_mode = #tpu.pipeline_mode<synchronous>, transform_indices = @transform_11, window_bounds = array<i64: 256, 256>}, {pipeline_mode = #tpu.pipeline_mode<synchronous>, transform_indices = @transform_12, window_bounds = array<i64: 1, 256>}, {pipeline_mode = #tpu.pipeline_mode<synchronous>, transform_indices = @transform_13, window_bounds = array<i64: 256, 256>}, {transform_indices = @transform_14, window_bounds = array<i64: 16, 256>}]} {
    %c0 = arith.constant 0 : index
    %c0_0 = arith.constant 0 : index
    %0 = vector.load %arg3[%c0, %c0_0] : memref<16x256xbf16, #tpu.memory_space<vmem>>, vector<16x256xbf16>
    %c0_1 = arith.constant 0 : index
    %c0_2 = arith.constant 0 : index
    %1 = vector.load %arg4[%c0_1, %c0_2] : memref<256x256xbf16, #tpu.memory_space<vmem>>, vector<256x256xbf16>
    %cst = arith.constant dense<0.000000e+00> : vector<16x256xf32>
    %2 = tpu.matmul %0, %1, %cst {dimension_numbers = #tpu.dot_dimension_numbers<[1], [0], [0], [1], [0, 0, 1, 1], [], []>} : vector<16x256xbf16>, vector<256x256xbf16>, vector<16x256xf32> -> vector<16x256xf32>
    %c0_3 = arith.constant 0 : index
    %c0_4 = arith.constant 0 : index
    %3 = vector.load %arg5[%c0_3, %c0_4] : memref<1x256xf32, #tpu.memory_space<vmem>>, vector<1x256xf32>
    %4 = vector.broadcast %3 : vector<1x256xf32> to vector<16x256xf32>
    %5 = arith.addf %2, %4 : vector<16x256xf32>
    %cst_5 = arith.constant 0.00999999977 : f32
    %6 = vector.broadcast %cst_5 : f32 to vector<16x256xf32>
    %7 = arith.mulf %6, %5 : vector<16x256xf32>
    %8 = arith.maximumf %5, %7 : vector<16x256xf32>
    %9 = arith.truncf %8 : vector<16x256xf32> to vector<16x256xbf16>
    %c0_6 = arith.constant 0 : index
    %c0_7 = arith.constant 0 : index
    %10 = vector.load %arg6[%c0_6, %c0_7] : memref<256x256xbf16, #tpu.memory_space<vmem>>, vector<256x256xbf16>
    %cst_8 = arith.constant dense<0.000000e+00> : vector<16x256xf32>
    %11 = tpu.matmul %9, %10, %cst_8 {dimension_numbers = #tpu.dot_dimension_numbers<[1], [0], [0], [1], [0, 0, 1, 1], [], []>} : vector<16x256xbf16>, vector<256x256xbf16>, vector<16x256xf32> -> vector<16x256xf32>
    %c0_9 = arith.constant 0 : index
    %c0_10 = arith.constant 0 : index
    %12 = vector.load %arg7[%c0_9, %c0_10] : memref<1x256xf32, #tpu.memory_space<vmem>>, vector<1x256xf32>
    %13 = vector.broadcast %12 : vector<1x256xf32> to vector<16x256xf32>
    %14 = arith.addf %11, %13 : vector<16x256xf32>
    %cst_11 = arith.constant 0.00999999977 : f32
    %15 = vector.broadcast %cst_11 : f32 to vector<16x256xf32>
    %16 = arith.mulf %15, %14 : vector<16x256xf32>
    %17 = arith.maximumf %14, %16 : vector<16x256xf32>
    %18 = arith.truncf %17 : vector<16x256xf32> to vector<16x256xbf16>
    %c0_12 = arith.constant 0 : index
    %c0_13 = arith.constant 0 : index
    %19 = vector.load %arg8[%c0_12, %c0_13] : memref<256x256xbf16, #tpu.memory_space<vmem>>, vector<256x256xbf16>
    %cst_14 = arith.constant dense<0.000000e+00> : vector<16x256xf32>
    %20 = tpu.matmul %18, %19, %cst_14 {dimension_numbers = #tpu.dot_dimension_numbers<[1], [0], [0], [1], [0, 0, 1, 1], [], []>} : vector<16x256xbf16>, vector<256x256xbf16>, vector<16x256xf32> -> vector<16x256xf32>
    %c0_15 = arith.constant 0 : index
    %c0_16 = arith.constant 0 : index
    %21 = vector.load %arg9[%c0_15, %c0_16] : memref<1x256xf32, #tpu.memory_space<vmem>>, vector<1x256xf32>
    %22 = vector.broadcast %21 : vector<1x256xf32> to vector<16x256xf32>
    %23 = arith.addf %20, %22 : vector<16x256xf32>
    %c0_17 = arith.constant 0 : index
    %c0_18 = arith.constant 0 : index
    %24 = vector.load %arg1[%c0_17, %c0_18] : memref<16x256xbf16, #tpu.memory_space<vmem>>, vector<16x256xbf16>
    %25 = arith.extf %24 : vector<16x256xbf16> to vector<16x256xf32>
    %c0_19 = arith.constant 0 : index
    %c0_20 = arith.constant 0 : index
    %26 = vector.load %arg2[%c0_19, %c0_20] : memref<16x256xbf16, #tpu.memory_space<vmem>>, vector<16x256xbf16>
    %27 = arith.extf %26 : vector<16x256xbf16> to vector<16x256xf32>
    %28 = arith.addf %25, %27 : vector<16x256xf32>
    %29 = arith.addf %28, %23 : vector<16x256xf32>
    %30 = arith.truncf %29 : vector<16x256xf32> to vector<16x256xbf16>
    %c0_21 = arith.constant 0 : index
    %c0_22 = arith.constant 0 : index
    %31 = vector.load %arg10[%c0_21, %c0_22] : memref<256x256xbf16, #tpu.memory_space<vmem>>, vector<256x256xbf16>
    %cst_23 = arith.constant dense<0.000000e+00> : vector<16x256xf32>
    %32 = tpu.matmul %30, %31, %cst_23 {dimension_numbers = #tpu.dot_dimension_numbers<[1], [0], [0], [1], [0, 0, 1, 1], [], []>} : vector<16x256xbf16>, vector<256x256xbf16>, vector<16x256xf32> -> vector<16x256xf32>
    %c0_24 = arith.constant 0 : index
    %c0_25 = arith.constant 0 : index
    %33 = vector.load %arg11[%c0_24, %c0_25] : memref<1x256xf32, #tpu.memory_space<vmem>>, vector<1x256xf32>
    %34 = vector.broadcast %33 : vector<1x256xf32> to vector<16x256xf32>
    %35 = arith.addf %32, %34 : vector<16x256xf32>
    %cst_26 = arith.constant 0.00999999977 : f32
    %36 = vector.broadcast %cst_26 : f32 to vector<16x256xf32>
    %37 = arith.mulf %36, %35 : vector<16x256xf32>
    %38 = arith.maximumf %35, %37 : vector<16x256xf32>
    %39 = arith.truncf %38 : vector<16x256xf32> to vector<16x256xbf16>
    %c0_27 = arith.constant 0 : index
    %c0_28 = arith.constant 0 : index
    %40 = vector.load %arg12[%c0_27, %c0_28] : memref<256x256xbf16, #tpu.memory_space<vmem>>, vector<256x256xbf16>
    %cst_29 = arith.constant dense<0.000000e+00> : vector<16x256xf32>
    %41 = tpu.matmul %39, %40, %cst_29 {dimension_numbers = #tpu.dot_dimension_numbers<[1], [0], [0], [1], [0, 0, 1, 1], [], []>} : vector<16x256xbf16>, vector<256x256xbf16>, vector<16x256xf32> -> vector<16x256xf32>
    %c0_30 = arith.constant 0 : index
    %c0_31 = arith.constant 0 : index
    %42 = vector.load %arg13[%c0_30, %c0_31] : memref<1x256xf32, #tpu.memory_space<vmem>>, vector<1x256xf32>
    %43 = vector.broadcast %42 : vector<1x256xf32> to vector<16x256xf32>
    %44 = arith.addf %41, %43 : vector<16x256xf32>
    %cst_32 = arith.constant 0.00999999977 : f32
    %45 = vector.broadcast %cst_32 : f32 to vector<16x256xf32>
    %46 = arith.mulf %45, %44 : vector<16x256xf32>
    %47 = arith.maximumf %44, %46 : vector<16x256xf32>
    %48 = arith.truncf %47 : vector<16x256xf32> to vector<16x256xbf16>
    %c0_33 = arith.constant 0 : index
    %c0_34 = arith.constant 0 : index
    %49 = vector.load %arg14[%c0_33, %c0_34] : memref<256x256xbf16, #tpu.memory_space<vmem>>, vector<256x256xbf16>
    %cst_35 = arith.constant dense<0.000000e+00> : vector<16x256xf32>
    %50 = tpu.matmul %48, %49, %cst_35 {dimension_numbers = #tpu.dot_dimension_numbers<[1], [0], [0], [1], [0, 0, 1, 1], [], []>} : vector<16x256xbf16>, vector<256x256xbf16>, vector<16x256xf32> -> vector<16x256xf32>
    %51 = arith.truncf %50 : vector<16x256xf32> to vector<16x256xbf16>
    %c0_36 = arith.constant 0 : index
    %c0_37 = arith.constant 0 : index
    %52 = vector.load %arg15[%c0_36, %c0_37] : memref<16x256xbf16, #tpu.memory_space<vmem>>, vector<16x256xbf16>
    tpu.vector_store %arg15[%c0_36, %c0_37], %51 {strides = array<i32>} : memref<16x256xbf16, #tpu.memory_space<vmem>>, vector<16x256xbf16>,
    return
  }
  func.func @transform_0(%arg0: i32) -> (i32, i32) {
    %c0_i32 = arith.constant 0 : i32
    %c0_i32_0 = arith.constant 0 : i32
    return %arg0, %c0_i32 : i32, i32
  }
  func.func @transform_1(%arg0: i32) -> (i32, i32) {
    %c0_i32 = arith.constant 0 : i32
    %c0_i32_0 = arith.constant 0 : i32
    return %arg0, %c0_i32 : i32, i32
  }
  func.func @transform_2(%arg0: i32) -> (i32, i32) {
    %c0_i32 = arith.constant 0 : i32
    %c0_i32_0 = arith.constant 0 : i32
    return %arg0, %c0_i32 : i32, i32
  }
  func.func @transform_3(%arg0: i32) -> (i32, i32) {
    %c0_i32 = arith.constant 0 : i32
    %c0_i32_0 = arith.constant 0 : i32
    %c0_i32_1 = arith.constant 0 : i32
    return %c0_i32, %c0_i32_0 : i32, i32
  }
  func.func @transform_4(%arg0: i32) -> (i32, i32) {
    %c0_i32 = arith.constant 0 : i32
    %c0_i32_0 = arith.constant 0 : i32
    %c0_i32_1 = arith.constant 0 : i32
    return %c0_i32, %c0_i32_0 : i32, i32
  }
  func.func @transform_5(%arg0: i32) -> (i32, i32) {
    %c0_i32 = arith.constant 0 : i32
    %c0_i32_0 = arith.constant 0 : i32
    %c0_i32_1 = arith.constant 0 : i32
    return %c0_i32, %c0_i32_0 : i32, i32
  }
  func.func @transform_6(%arg0: i32) -> (i32, i32) {
    %c0_i32 = arith.constant 0 : i32
    %c0_i32_0 = arith.constant 0 : i32
    %c0_i32_1 = arith.constant 0 : i32
    return %c0_i32, %c0_i32_0 : i32, i32
  }
  func.func @transform_7(%arg0: i32) -> (i32, i32) {
    %c0_i32 = arith.constant 0 : i32
    %c0_i32_0 = arith.constant 0 : i32
    %c0_i32_1 = arith.constant 0 : i32
    return %c0_i32, %c0_i32_0 : i32, i32
  }
  func.func @transform_8(%arg0: i32) -> (i32, i32) {
    %c0_i32 = arith.constant 0 : i32
    %c0_i32_0 = arith.constant 0 : i32
    %c0_i32_1 = arith.constant 0 : i32
    return %c0_i32, %c0_i32_0 : i32, i32
  }
  func.func @transform_9(%arg0: i32) -> (i32, i32) {
    %c0_i32 = arith.constant 0 : i32
    %c0_i32_0 = arith.constant 0 : i32
    %c0_i32_1 = arith.constant 0 : i32
    return %c0_i32, %c0_i32_0 : i32, i32
  }
  func.func @transform_10(%arg0: i32) -> (i32, i32) {
    %c0_i32 = arith.constant 0 : i32
    %c0_i32_0 = arith.constant 0 : i32
    %c0_i32_1 = arith.constant 0 : i32
    return %c0_i32, %c0_i32_0 : i32, i32
  }
  func.func @transform_11(%arg0: i32) -> (i32, i32) {
    %c0_i32 = arith.constant 0 : i32
    %c0_i32_0 = arith.constant 0 : i32
    %c0_i32_1 = arith.constant 0 : i32
    return %c0_i32, %c0_i32_0 : i32, i32
  }
  func.func @transform_12(%arg0: i32) -> (i32, i32) {
    %c0_i32 = arith.constant 0 : i32
    %c0_i32_0 = arith.constant 0 : i32
    %c0_i32_1 = arith.constant 0 : i32
    return %c0_i32, %c0_i32_0 : i32, i32
  }
  func.func @transform_13(%arg0: i32) -> (i32, i32) {
    %c0_i32 = arith.constant 0 : i32
    %c0_i32_0 = arith.constant 0 : i32
    %c0_i32_1 = arith.constant 0 : i32
    return %c0_i32, %c0_i32_0 : i32, i32
  }
  func.func @transform_14(%arg0: i32) -> (i32, i32) {
    %c0_i32 = arith.constant 0 : i32
    %c0_i32_0 = arith.constant 0 : i32
    return %arg0, %c0_i32 : i32, i32
  }
}

</mosaic_0001>

<bundles_post_ra>
// kernel: diffusion_net_sum.1
= control target key start
LH: loop header
LB: loop body
LE: loop exit
PB: predicated region body
PF: predicated region fallthrough
CT: control target
= control target key end

     0   :  { %s3452_s0 = inlined_call_operand.vmem [shape: bf16[48,256], index: 0, kind: input, shape index: {}]   ;;  %s3453_s1 = inlined_call_operand.vmem [shape: bf16[48,256], index: 1, kind: input, shape index: {}]   ;;  %s3454_s2 = inlined_call_operand.vmem [shape: bf16[48,256], index: 2, kind: input, shape index: {}]   ;;  %s3455_s3 = inlined_call_operand.vmem [shape: bf16[256,256], index: 3, kind: input, shape index: {}]   ;;  %s3456_s4 = inlined_call_operand.vmem [shape: f32[1,256], index: 4, kind: input, shape index: {}]   ;;  %s3457_s5 = inlined_call_operand.vmem [shape: bf16[256,256], index: 5, kind: input, shape index: {}]   ;;  %s3458_s6 = inlined_call_operand.vmem [shape: f32[1,256], index: 6, kind: input, shape index: {}]   ;;  %s3459_s7 = inlined_call_operand.hbm [shape: bf16[256,256], index: 7, kind: input, shape index: {}]   ;;  %s3460_s8 = inlined_call_operand.vmem [shape: f32[1,256], index: 8, kind: input, shape index: {}]   ;;  %s3461_s9 = inlined_call_operand.hbm [shape: bf16[256,256], index: 9, kind: input, shape index: {}]   ;;  %s3462_s10 = inlined_call_operand.vmem [shape: f32[1,256], index: 10, kind: input, shape index: {}]   ;;  %s3463_s11 = inlined_call_operand.hbm [shape: bf16[256,256], index: 11, kind: input, shape index: {}]   ;;  %s3464_s12 = inlined_call_operand.vmem [shape: f32[1,256], index: 12, kind: input, shape index: {}]   ;;  %s3465_s13 = inlined_call_operand.hbm [shape: bf16[256,256], index: 13, kind: input, shape index: {}]   ;;  %s3466_s14 = inlined_call_operand.vmem [shape: bf16[48,256], index: 14, kind: output, shape index: {}]  }
   0x1   :  { %3471 = sst [smem:[#allocation12_spill]] %s3460_s8 }
   0x2   :  { %3472 = sst [smem:[#allocation13_spill]] %s3462_s10 }
   0x3   :  { %3473 = sst [smem:[#allocation14_spill]] %s3464_s12 }
   0x4   :  { %3474 = sst [smem:[#allocation15_spill]] %s3466_s14 }
   0x5   :  { %19 = vsyncpa [#allocation3], 0 }
   0x6   :  { %20 = vsyncpa [#allocation5], 0 }
   0x7   :  { %21 = vsyncpa [#allocation8], 0  ;;  %s3050_s29 = smov 0  }
   0x8 LB: > { %s3467_s30 = sadd.s32 4294967295, %s2967_s29   ;;  %p2268_p0 = scmp.ge.s32.totalorder %s2967_s29, 1  ;;  %s2967_s29 = sphi %s3050_s29, %s27_s29  }
   0x9   : > { %p367_p1 = scmp.lt.s32.totalorder %s2967_s29, 4  ;;  %p3060_p2 = scmp.eq.s32.totalorder %s3467_s30, 0 }
   0xa   : > { %s2969_s17 = smov [#allocation4]   ;;  %s2970_s19 = smov [#allocation2]  }
   0xb   : > { %s3475_s15 = scalar_select %p3060_p2, 1, 0 }
   0xc   : > { %p3064_p3 = pnand %p2268_p0, %p367_p1  ;;  %s407_s18 = sshll.u32 %s2969_s17, 4  ;;  %s3068_s18 = int_to_ptr.vmem [resolvable:$true] %s407_s18 }
   0xd   : > { %s391_s20 = sshll.u32 %s2970_s19, 4  ;;  %s2971_s22 = smov [#allocation6]   ;;  %s3072_s20 = int_to_ptr.vmem [resolvable:$true] %s391_s20 }
   0xe   : > { %s3476_s16 = scalar_select %p3064_p3, 1, 0 }
   0xf   : > { %p2511_p4 = pneg %p3064_p3  ;;  %s423_s23 = sshll.u32 %s2971_s22, 4  ;;  %s3080_s23 = int_to_ptr.vmem [resolvable:$true] %s423_s23 }
  0x10   : > { %s2972_s24 = smov [#allocation7]   ;;  %s2837_s28 = scalar_lea.hbm %s3461_s9, 4096 }
  0x11   : > { %p3076_p5 = pnand %p3060_p2, %p2511_p4  ;;  %s3082_s25 = sshll.u32 %s2972_s24, 4  ;;  %s440_s25 = int_to_ptr.vmem [resolvable:$true] %s3082_s25 }
  0x12   : > { %p2838_p6 = scmp.ne.s32.totalorder %s3461_s9, %s2837_s28  ;;  %p2844_p10 = scmp.lt.u32.totalorder %s2837_s28, %s3461_s9 }
  0x13   : > { %p3092_p7 = pneg %p3076_p5 }
  0x15   : > { %p2840_p8 = pnand %p3092_p7, %p2838_p6 }
  0x17   : > { %p2841_p9 = pneg %p2840_p8 }
  0x19   : > { %p2846_p11 = pnand %p2844_p10, %p2841_p9 }
  0x1b   : > { %2849 = shalt.err (!%p2846_p11)
}
  0x1c   : > { %s2850_s26 = scalar_lea.vmem %s3068_s18, 4096  ;;  %p2858_p1 = scmp.lt.s32.totalorder %s3068_s18, %s3068_s18 }
  0x1d   : > { %p2851_p12 = scmp.ne.s32.totalorder %s3068_s18, %s2850_s26  ;;  %p2859_p4 = scmp.lt.s32.totalorder %s2850_s26, %s2850_s26 }
  0x1f   : > { %p2853_p13 = pnand %p2851_p12, %p3092_p7  ;;  %p2860_p6 = por %p2859_p4, %p2858_p1 }
  0x21   : > { %p2854_p0 = pneg %p2853_p13 }
  0x23   : > { %p2861_p8 = pnand %p2860_p6, %p2854_p0 }
  0x25   : > { %2864 = shalt.err (!%p2861_p8)
}
  0x26   : > { %s2973_s27 = smov 128   ;;  %s2974_s28 = smov 8  }
  0x27   : > { %2517 = dma.hbm_to_vmem [thread:$0]  (!%p3076_p5), %s3461_s9, 4096, %s3068_s18, [#allocation5], %s2973_s27, %s2973_s27, %s2974_s28  }
  0x28   : > { %s2865_s26 = scalar_lea.hbm %s3459_s7, 4096 }
  0x29   : > { %p2866_p9 = scmp.ne.s32.totalorder %s3459_s7, %s2865_s26  ;;  %p2872_p12 = scmp.lt.u32.totalorder %s2865_s26, %s3459_s7 }
  0x2b   : > { %p2868_p10 = pnand %p2866_p9, %p3092_p7 }
  0x2d   : > { %p2869_p11 = pneg %p2868_p10 }
  0x2f   : > { %p2874_p13 = pnand %p2872_p12, %p2869_p11 }
  0x31   : > { %2877 = shalt.err (!%p2874_p13)
}
  0x32   : > { %s2878_s18 = scalar_lea.vmem %s3072_s20, 4096  ;;  %p2886_p6 = scmp.lt.s32.totalorder %s3072_s20, %s3072_s20 }
  0x33   : > { %p2879_p0 = scmp.ne.s32.totalorder %s3072_s20, %s2878_s18  ;;  %p2887_p8 = scmp.lt.s32.totalorder %s2878_s18, %s2878_s18 }
  0x35   : > { %p2881_p1 = pnand %p2879_p0, %p3092_p7  ;;  %p2888_p9 = por %p2887_p8, %p2886_p6 }
  0x37   : > { %p2882_p4 = pneg %p2881_p1 }
  0x39   : > { %p2889_p10 = pnand %p2888_p9, %p2882_p4 }
  0x3b   : > { %2892 = shalt.err (!%p2889_p10)
}
  0x3c   : > { %2514 = dma.hbm_to_vmem [thread:$0]  (!%p3076_p5), %s3459_s7, 4096, %s3072_s20, [#allocation3], %s2973_s27, %s2973_s27, %s2974_s28  }
  0x3d   : > { %s2893_s17 = scalar_lea.hbm %s3463_s11, 4096 }
  0x3e   : > { %p2894_p11 = scmp.ne.s32.totalorder %s3463_s11, %s2893_s17  ;;  %p2900_p0 = scmp.lt.u32.totalorder %s2893_s17, %s3463_s11 }
  0x40   : > { %p2896_p12 = pnand %p2894_p11, %p3092_p7 }
  0x42   : > { %p2897_p13 = pneg %p2896_p12 }
  0x44   : > { %p2902_p1 = pnand %p2900_p0, %p2897_p13 }
  0x46   : > { %2905 = shalt.err (!%p2902_p1)
}
  0x47   : > { %s2906_s20 = scalar_lea.vmem %s3080_s23, 4096  ;;  %p2914_p9 = scmp.lt.s32.totalorder %s3080_s23, %s3080_s23 }
  0x48   : > { %p2907_p4 = scmp.ne.s32.totalorder %s3080_s23, %s2906_s20  ;;  %p2915_p10 = scmp.lt.s32.totalorder %s2906_s20, %s2906_s20 }
  0x4a   : > { %p2909_p6 = pnand %p2907_p4, %p3092_p7  ;;  %p2916_p11 = por %p2915_p10, %p2914_p9 }
  0x4c   : > { %p2910_p8 = pneg %p2909_p6 }
  0x4e   : > { %p2917_p12 = pnand %p2916_p11, %p2910_p8 }
  0x50   : > { %2920 = shalt.err (!%p2917_p12)
}
  0x51   : > { %2520 = dma.hbm_to_vmem [thread:$0]  (!%p3076_p5), %s3463_s11, 4096, %s3080_s23, [#allocation5], %s2973_s27, %s2973_s27, %s2974_s28  }
  0x52   : > { %s2921_s14 = scalar_lea.hbm %s3465_s13, 4096 }
  0x53   : > { %p2922_p13 = scmp.ne.s32.totalorder %s3465_s13, %s2921_s14  ;;  %p2928_p4 = scmp.lt.u32.totalorder %s2921_s14, %s3465_s13 }
  0x55   : > { %p2924_p0 = pnand %p2922_p13, %p3092_p7 }
  0x57   : > { %p2925_p1 = pneg %p2924_p0 }
  0x59   : > { %p2930_p6 = pnand %p2928_p4, %p2925_p1 }
  0x5b   : > { %2933 = shalt.err (!%p2930_p6)
}
  0x5c   : > { %s2934_s26 = scalar_lea.vmem %s440_s25, 4096  ;;  %p2942_p11 = scmp.lt.s32.totalorder %s440_s25, %s440_s25 }
  0x5d   : > { %p2935_p8 = scmp.ne.s32.totalorder %s440_s25, %s2934_s26  ;;  %p2943_p12 = scmp.lt.s32.totalorder %s2934_s26, %s2934_s26 }
  0x5f   : > { %p2937_p9 = pnand %p2935_p8, %p3092_p7  ;;  %p2944_p2 = por %p2943_p12, %p2942_p11 }
  0x61   : > { %p2938_p10 = pneg %p2937_p9 }
  0x63   : > { %p2945_p3 = pnand %p2944_p2, %p2938_p10 }
  0x65   : > { %2948 = shalt.err (!%p2945_p3)
}
  0x66   : > { %2523 = dma.hbm_to_vmem [thread:$0]  (!%p3076_p5), %s3465_s13, 4096, %s440_s25, [#allocation8], %s2973_s27, %s2973_s27, %s2974_s28  }
  0x67   : > { %p3479_p13 = scmp.ne.s32.totalorder %s3476_s16, 0 }
  0x68   : > { %p3480_p7 = scmp.ne.s32.totalorder (!%p3479_p13), %s3475_s15, 0 }
  0x69   : > { %485 = sbr.rel (%p3479_p13) target bundleno = 1518 (0x5ee), region = 76 }
  0x70   : > { %2954 = dma.done.wait (%p3480_p7), [#allocation3], 4096  }
  0x71   : > { %2956 = vsyncadd (%p3480_p7), [#allocation3], 4294963200 }
  0x72   : > { %2958 = dma.done.wait (%p3480_p7), [#allocation5], 8192  }
  0x73   : > { %2960 = vsyncadd (%p3480_p7), [#allocation5], 4294959104 }
  0x74   : > { %2962 = dma.done.wait (%p3480_p7), [#allocation8], 4096  }
  0x75   : > { %2964 = vsyncadd (%p3480_p7), [#allocation8], 4294963200  ;;  %v2546_v0 = vld [vmem:[%s3455_s3 + $0x4] ss:$8 sps:$4 sm:$0xff]   ;;  %v2548_v1 = vld [vmem:[%s3455_s3] ss:$8 sps:$4 sm:$0xff]  }
  0x76   : > { %801 = vmatprep.subr.bf16.mxu0 %v2546_v0  ;;  %v2549_v2 = vld [vmem:[%s3455_s3 + $0x14] ss:$8 sps:$4 sm:$0xff]   ;;  %v2551_v3 = vld [vmem:[%s3455_s3 + $0x10] ss:$8 sps:$4 sm:$0xff]   ;;  %v2552_v4 = vld [vmem:[%s3455_s3 + $0x24] ss:$8 sps:$4 sm:$0xff]  }
  0x77   : > { %802 = vmatpush1.bf16.msra.mxu0 %v2548_v1  ;;  %s3481_s12 = sadd.s32 4294967295, %s2967_s29   ;;  %v2554_v5 = vld [vmem:[%s3455_s3 + $0x20] ss:$8 sps:$4 sm:$0xff]   ;;  %v2555_v6 = vld [vmem:[%s3455_s3 + $0x34] ss:$8 sps:$4 sm:$0xff]   ;;  %s3482_s27 = sld [smem:[#allocation12_spill]] }
  0x78   : > { %803 = vmatprep.subr.bf16.mxu0 %v2549_v2  ;;  %s2279_s14 = sshll.u32 %s3481_s12, 1  ;;  %v2557_v7 = vld [vmem:[%s3455_s3 + $0x30] ss:$8 sps:$4 sm:$0xff]   ;;  %v2558_v8 = vld [vmem:[%s3455_s3 + $0x44] ss:$8 sps:$4 sm:$0xff]   ;;  %s3483_s15 = sld [smem:[#allocation13_spill]] }
  0x79   : > { %p558_p2 = scmp.lt.s32.totalorder %s2279_s14, 5  ;;  %v2560_v9 = vld [vmem:[%s3455_s3 + $0x40] ss:$8 sps:$4 sm:$0xff]   ;;  %v2561_v10 = vld [vmem:[%s3455_s3 + $0x54] ss:$8 sps:$4 sm:$0xff]   ;;  %s3484_s19 = sld [smem:[#allocation14_spill]] }
  0x7a   : > { %v2563_v11 = vld [vmem:[%s3455_s3 + $0x50] ss:$8 sps:$4 sm:$0xff]   ;;  %v2564_v12 = vld [vmem:[%s3455_s3 + $0x64] ss:$8 sps:$4 sm:$0xff]   ;;  %v2566_v13 = vld [vmem:[%s3455_s3 + $0x60] ss:$8 sps:$4 sm:$0xff]  }
  0x7b   : > { %804 = vmatpush1.bf16.msra.mxu0 %v2551_v3  ;;  %s3487_s14 = smov (!%p558_p2, %s2279_s14), 5  ;;  %v2567_v14 = vld [vmem:[%s3455_s3 + $0x74] ss:$8 sps:$4 sm:$0xff]   ;;  %v2597_v16 = vld [vmem:[%s3457_s5 + $0x4] ss:$8 sps:$4 sm:$0xff]   ;;  %s3485_s24 = sld [smem:[#allocation15_spill]] }
  0x7c   : > { %805 = vmatprep.subr.bf16.mxu0 %v2552_v4  ;;  %s3239_s28 = sshll.u32 %s3487_s14, 3  ;;  %v2599_v17 = vld [vmem:[%s3457_s5] ss:$8 sps:$4 sm:$0xff]   ;;  %v2600_v18 = vld [vmem:[%s3457_s5 + $0x14] ss:$8 sps:$4 sm:$0xff]   ;;  %1058 = vmatprep.subr.bf16.mxu1 %v2597_v16 }
  0x7d   : > { %s3248_s12 = scalar_lea.vmem %s3454_s2, %s3239_s28  ;;  %1059 = vmatpush1.bf16.msra.mxu1 %v2599_v17  ;;  %v2602_v19 = vld [vmem:[%s3457_s5 + $0x10] ss:$8 sps:$4 sm:$0xff]   ;;  %v2603_v21 = vld [vmem:[%s3457_s5 + $0x24] ss:$8 sps:$4 sm:$0xff]   ;;  %v2605_v23 = vld [vmem:[%s3457_s5 + $0x20] ss:$8 sps:$4 sm:$0xff]   ;;  %s562_s23 = scalar_lea.vmem %s3452_s0, %s3239_s28 }
  0x7e   : > { %v2596_v15 = vld [vmem:[%s3248_s12 + $0x4] ss:$8 sps:$4 sm:$0xff]   ;;  %v2569_v20 = vld [vmem:[%s3455_s3 + $0x70] ss:$8 sps:$4 sm:$0xff]   ;;  %1060 = vmatprep.subr.bf16.mxu1 %v2600_v18  ;;  %v2572_v24 = vld [vmem:[%s3455_s3 + $0x80] ss:$8 sps:$4 sm:$0xff]   ;;  %s569_s16 = scalar_lea.vmem %s3453_s1, %s3239_s28 }
  0x7f   : > { %806 = vmatpush1.bf16.msra.mxu0 %v2554_v5  ;;  %833 = vmatprep.mubr.bf16.mxu0 %v2596_v15  ;;  %v2570_v22 = vld [vmem:[%s3455_s3 + $0x84] ss:$8 sps:$4 sm:$0xff]   ;;  %v2606_v25 = vld [vmem:[%s3457_s5 + $0x34] ss:$8 sps:$4 sm:$0xff]   ;;  %v2608_v27 = vld [vmem:[%s3457_s5 + $0x30] ss:$8 sps:$4 sm:$0xff]  }
  0x80   : > { %807 = vmatprep.subr.bf16.mxu0 %v2555_v6  ;;  %v2573_v26 = vld [vmem:[%s3455_s3 + $0x94] ss:$8 sps:$4 sm:$0xff]   ;;  %v2575_v28 = vld [vmem:[%s3455_s3 + $0x90] ss:$8 sps:$4 sm:$0xff]   ;;  %v2609_v29 = vld [vmem:[%s3457_s5 + $0x44] ss:$8 sps:$4 sm:$0xff]  }
  0x81   : > { %1061 = vmatpush1.bf16.msra.mxu1 %v2602_v19  ;;  %v2576_v30 = vld [vmem:[%s3455_s3 + $0xa4] ss:$8 sps:$4 sm:$0xff]   ;;  %v2578_v31 = vld [vmem:[%s3455_s3 + $0xa0] ss:$8 sps:$4 sm:$0xff]   ;;  %v2579_v33 = vld [vmem:[%s3455_s3 + $0xb4] ss:$8 sps:$4 sm:$0xff]  }
  0x82   : > { %1062 = vmatprep.subr.bf16.mxu1 %v2603_v21  ;;  %v2611_v32 = vld [vmem:[%s3457_s5 + $0x40] ss:$8 sps:$4 sm:$0xff]   ;;  %v2612_v34 = vld [vmem:[%s3457_s5 + $0x54] ss:$8 sps:$4 sm:$0xff]   ;;  %v2614_v35 = vld [vmem:[%s3457_s5 + $0x50] ss:$8 sps:$4 sm:$0xff]  }
  0x83   : > { %808 = vmatpush1.bf16.msra.mxu0 %v2557_v7  ;;  %v2581_v36 = vld [vmem:[%s3455_s3 + $0xb0] ss:$8 sps:$4 sm:$0xff]   ;;  %v2615_v37 = vld [vmem:[%s3457_s5 + $0x64] ss:$8 sps:$4 sm:$0xff]   ;;  %v2617_v39 = vld [vmem:[%s3457_s5 + $0x60] ss:$8 sps:$4 sm:$0xff]  }
  0x84   : > { %809 = vmatprep.subr.bf16.mxu0 %v2558_v8  ;;  %v2582_v38 = vld [vmem:[%s3455_s3 + $0xc4] ss:$8 sps:$4 sm:$0xff]   ;;  %v2584_v40 = vld [vmem:[%s3455_s3 + $0xc0] ss:$8 sps:$4 sm:$0xff]   ;;  %v2618_v41 = vld [vmem:[%s3457_s5 + $0x74] ss:$8 sps:$4 sm:$0xff]  }
  0x85   : > { %1063 = vmatpush1.bf16.msra.mxu1 %v2605_v23  ;;  %v2585_v42 = vld [vmem:[%s3455_s3 + $0xd4] ss:$8 sps:$4 sm:$0xff]   ;;  %v2620_v43 = vld [vmem:[%s3457_s5 + $0x70] ss:$8 sps:$4 sm:$0xff]   ;;  %v2621_v45 = vld [vmem:[%s3457_s5 + $0x84] ss:$8 sps:$4 sm:$0xff]  }
  0x86   : > { %1064 = vmatprep.subr.bf16.mxu1 %v2606_v25  ;;  %v2587_v44 = vld [vmem:[%s3455_s3 + $0xd0] ss:$8 sps:$4 sm:$0xff]   ;;  %v2588_v46 = vld [vmem:[%s3455_s3 + $0xe4] ss:$8 sps:$4 sm:$0xff]   ;;  %v2623_v47 = vld [vmem:[%s3457_s5 + $0x80] ss:$8 sps:$4 sm:$0xff]  }
  0x87   : > { %810 = vmatpush1.bf16.msra.mxu0 %v2560_v9  ;;  %v2590_v48 = vld [vmem:[%s3455_s3 + $0xe0] ss:$8 sps:$4 sm:$0xff]   ;;  %v2624_v49 = vld [vmem:[%s3457_s5 + $0x94] ss:$8 sps:$4 sm:$0xff]   ;;  %v2626_v51 = vld [vmem:[%s3457_s5 + $0x90] ss:$8 sps:$4 sm:$0xff]  }
  0x88   : > { %811 = vmatprep.subr.bf16.mxu0 %v2561_v10  ;;  %v2591_v50 = vld [vmem:[%s3455_s3 + $0xf4] ss:$8 sps:$4 sm:$0xff]   ;;  %v2593_v52 = vld [vmem:[%s3455_s3 + $0xf0] ss:$8 sps:$4 sm:$0xff]   ;;  %v2627_v53 = vld [vmem:[%s3457_s5 + $0xa4] ss:$8 sps:$4 sm:$0xff]  }
  0x89   : > { %1065 = vmatpush1.bf16.msra.mxu1 %v2608_v27  ;;  %v2594_v54 = vld [vmem:[%s3248_s12] ss:$8 sps:$4 sm:$0xff]   ;;  %v2630_v56 = vld [vmem:[%s3457_s5 + $0xb4] ss:$8 sps:$4 sm:$0xff]   ;;  %v2632_v57 = vld [vmem:[%s3457_s5 + $0xb0] ss:$8 sps:$4 sm:$0xff]   ;;  %s583_s12 = scalar_lea.vmem %s3485_s24, %s3239_s28 }
  0x8a   : > { %1066 = vmatprep.subr.bf16.mxu1 %v2609_v29  ;;  %v2629_v55 = vld [vmem:[%s3457_s5 + $0xa0] ss:$8 sps:$4 sm:$0xff]   ;;  %v2633_v58 = vld [vmem:[%s3457_s5 + $0xc4] ss:$8 sps:$4 sm:$0xff]   ;;  %v2636_v60 = vld [vmem:[%s3457_s5 + $0xd4] ss:$8 sps:$4 sm:$0xff]  }
  0x8b   : > { %812 = vmatpush1.bf16.msra.mxu0 %v2563_v11  ;;  %v2635_v59 = vld [vmem:[%s3457_s5 + $0xc0] ss:$8 sps:$4 sm:$0xff]   ;;  %v2638_v61 = vld [vmem:[%s3457_s5 + $0xd0] ss:$8 sps:$4 sm:$0xff]   ;;  %v2639_v62 = vld [vmem:[%s3457_s5 + $0xe4] ss:$8 sps:$4 sm:$0xff]  }
  0x8c   : > { %813 = vmatprep.subr.bf16.mxu0 %v2564_v12  ;;  %v2641_v63 = vld [vmem:[%s3457_s5 + $0xe0] ss:$8 sps:$4 sm:$0xff]   ;;  %v2642_v0 = vld [vmem:[%s3457_s5 + $0xf4] ss:$8 sps:$4 sm:$0xff]   ;;  %v2644_v1 = vld [vmem:[%s3457_s5 + $0xf0] ss:$8 sps:$4 sm:$0xff]  }
  0x8d   : > { %1067 = vmatpush1.bf16.msra.mxu1 %v2611_v32  ;;  %v2645_v2 = vld [vmem:[#allocation2] ss:$8 sps:$4 sm:$0xff]   ;;  %v2647_v3 = vld [vmem:[#allocation2 + $0x4] ss:$8 sps:$4 sm:$0xff]   ;;  %v2650_v4 = vld [vmem:[#allocation2 + $0x14] ss:$8 sps:$4 sm:$0xff]  }
  0x8e   : > { %1068 = vmatprep.subr.bf16.mxu1 %v2612_v34  ;;  %v2648_v5 = vld [vmem:[#allocation2 + $0x10] ss:$8 sps:$4 sm:$0xff]   ;;  %v2653_v6 = vld [vmem:[#allocation2 + $0x24] ss:$8 sps:$4 sm:$0xff]   ;;  %v2651_v7 = vld [vmem:[#allocation2 + $0x20] ss:$8 sps:$4 sm:$0xff]  }
  0x8f   : > { %814 = vmatpush1.bf16.msra.mxu0 %v2566_v13  ;;  %v2656_v8 = vld [vmem:[#allocation2 + $0x34] ss:$8 sps:$4 sm:$0xff]   ;;  %v2654_v9 = vld [vmem:[#allocation2 + $0x30] ss:$8 sps:$4 sm:$0xff]   ;;  %v2659_v10 = vld [vmem:[#allocation2 + $0x44] ss:$8 sps:$4 sm:$0xff]  }
  0x90   : > { %815 = vmatprep.subr.bf16.mxu0 %v2567_v14  ;;  %v2657_v11 = vld [vmem:[#allocation2 + $0x40] ss:$8 sps:$4 sm:$0xff]   ;;  %v2662_v12 = vld [vmem:[#allocation2 + $0x54] ss:$8 sps:$4 sm:$0xff]   ;;  %v2660_v13 = vld [vmem:[#allocation2 + $0x50] ss:$8 sps:$4 sm:$0xff]  }
  0x91   : > { %1069 = vmatpush1.bf16.msra.mxu1 %v2614_v35  ;;  %v2665_v14 = vld [vmem:[#allocation2 + $0x64] ss:$8 sps:$4 sm:$0xff]   ;;  %v2663_v15 = vld [vmem:[#allocation2 + $0x60] ss:$8 sps:$4 sm:$0xff]   ;;  %v2668_v16 = vld [vmem:[#allocation2 + $0x74] ss:$8 sps:$4 sm:$0xff]  }
  0x92   : > { %1070 = vmatprep.subr.bf16.mxu1 %v2615_v37  ;;  %v2666_v17 = vld [vmem:[#allocation2 + $0x70] ss:$8 sps:$4 sm:$0xff]   ;;  %v2671_v18 = vld [vmem:[#allocation2 + $0x84] ss:$8 sps:$4 sm:$0xff]   ;;  %v2669_v19 = vld [vmem:[#allocation2 + $0x80] ss:$8 sps:$4 sm:$0xff]  }
  0x93   : > { %816 = vmatpush1.bf16.msra.mxu0 %v2569_v20  ;;  %v2674_v20 = vld [vmem:[#allocation2 + $0x94] ss:$8 sps:$4 sm:$0xff]   ;;  %v2672_v21 = vld [vmem:[#allocation2 + $0x90] ss:$8 sps:$4 sm:$0xff]   ;;  %v2675_v23 = vld [vmem:[#allocation2 + $0xa0] ss:$8 sps:$4 sm:$0xff]  }
  0x94   : > { %817 = vmatprep.subr.bf16.mxu0 %v2570_v22  ;;  %v2677_v22 = vld [vmem:[#allocation2 + $0xa4] ss:$8 sps:$4 sm:$0xff]   ;;  %v2678_v25 = vld [vmem:[#allocation2 + $0xb0] ss:$8 sps:$4 sm:$0xff]   ;;  %v2681_v27 = vld [vmem:[#allocation2 + $0xc0] ss:$8 sps:$4 sm:$0xff]  }
  0x95   : > { %1071 = vmatpush1.bf16.msra.mxu1 %v2617_v39 }
  0x96   : > { %1072 = vmatprep.subr.bf16.mxu1 %v2618_v41 }
  0x97   : > { %818 = vmatpush1.bf16.msra.mxu0 %v2572_v24  ;;  %v2680_v24 = vld [vmem:[#allocation2 + $0xb4] ss:$8 sps:$4 sm:$0xff]  }
  0x98   : > { %819 = vmatprep.subr.bf16.mxu0 %v2573_v26  ;;  %v2683_v26 = vld [vmem:[#allocation2 + $0xc4] ss:$8 sps:$4 sm:$0xff]  }
  0x99   : > { %1073 = vmatpush1.bf16.msra.mxu1 %v2620_v43 }
  0x9a   : > { %1074 = vmatprep.subr.bf16.mxu1 %v2621_v45 }
  0x9b   : > { %820 = vmatpush1.bf16.msra.mxu0 %v2575_v28  ;;  %v621_v28 = vlaneseq }
  0x9c   : > { %821 = vmatprep.subr.bf16.mxu0 %v2576_v30 }
  0x9d   : > { %1075 = vmatpush1.bf16.msra.mxu1 %v2623_v47  ;;  %v622_v29 = vshrl.u32 %v621_v28, 7 }
  0x9e   : > { %1076 = vmatprep.subr.bf16.mxu1 %v2624_v49 }
  0x9f   : > { %822 = vmatpush1.bf16.msra.mxu0 %v2578_v31  ;;  %v3408_v30 = vsub.s32 0, %v622_v29  ;;  %v619_v31 = vld [vmem:[%s3456_s4] sm:$0x3]  ;;  %v3413_v32 = vsub.s32 1, %v622_v29 }
  0xa0   : > { %823 = vmatprep.subr.bf16.mxu0 %v2579_v33 }
  0xa1   : > { %1077 = vmatpush1.bf16.msra.mxu1 %v2626_v51  ;;  %v624_v33 = vrot.slane %v619_v31, %v3408_v30  ;;  %v628_v34 = vrot.slane %v619_v31, %v3413_v32 }
  0xa2   : > { %1078 = vmatprep.subr.bf16.mxu1 %v2627_v53  ;;  %v2686_v53 = vld [vmem:[#allocation2 + $0xd4] ss:$8 sps:$4 sm:$0xff]  }
  0xa3   : > { %824 = vmatpush1.bf16.msra.mxu0 %v2581_v36 }
  0xa4   : > { %825 = vmatprep.subr.bf16.mxu0 %v2582_v38 }
  0xa5   : > { %1079 = vmatpush1.bf16.msra.mxu1 %v2629_v55  ;;  %v2689_v55 = vld [vmem:[#allocation2 + $0xe4] ss:$8 sps:$4 sm:$0xff]  }
  0xa6   : > { %1080 = vmatprep.subr.bf16.mxu1 %v2630_v56  ;;  %v2687_v56 = vld [vmem:[#allocation2 + $0xe0] ss:$8 sps:$4 sm:$0xff]  }
  0xa7   : > { %826 = vmatpush1.bf16.msra.mxu0 %v2584_v40 }
  0xa8   : > { %827 = vmatprep.subr.bf16.mxu0 %v2585_v42 }
  0xa9   : > { %1081 = vmatpush1.bf16.msra.mxu1 %v2632_v57  ;;  %v2692_v57 = vld [vmem:[#allocation2 + $0xf4] ss:$8 sps:$4 sm:$0xff]  }
  0xaa   : > { %1082 = vmatprep.subr.bf16.mxu1 %v2633_v58  ;;  %v2690_v58 = vld [vmem:[#allocation2 + $0xf0] ss:$8 sps:$4 sm:$0xff]  }
  0xab   : > { %828 = vmatpush1.bf16.msra.mxu0 %v2587_v44 }
  0xac   : > { %829 = vmatprep.subr.bf16.mxu0 %v2588_v46 }
  0xad   : > { %1083 = vmatpush1.bf16.msra.mxu1 %v2635_v59  ;;  %v2693_v59 = vld [vmem:[#allocation4] ss:$8 sps:$4 sm:$0xff]  }
  0xae   : > { %1084 = vmatprep.subr.bf16.mxu1 %v2636_v60  ;;  %v2695_v60 = vld [vmem:[#allocation4 + $0x4] ss:$8 sps:$4 sm:$0xff]  }
  0xaf   : > { %830 = vmatpush1.bf16.msra.mxu0 %v2590_v48 }
  0xb0   : > { %831 = vmatprep.subr.bf16.mxu0 %v2591_v50 }
  0xb1   : > { %1085 = vmatpush1.bf16.msra.mxu1 %v2638_v61  ;;  %v2698_v61 = vld [vmem:[#allocation4 + $0x14] ss:$8 sps:$4 sm:$0xff]  }
  0xb2   : > { %1086 = vmatprep.subr.bf16.mxu1 %v2639_v62  ;;  %v2696_v62 = vld [vmem:[#allocation4 + $0x10] ss:$8 sps:$4 sm:$0xff]  }
  0xb3   : > { %832 = vmatpush1.bf16.msra.mxu0 %v2593_v52 }
  0xb4   : > { %1315 = vmatprep.subr.bf16.mxu0 %v2647_v3  ;;  %v2707_v3 = vld [vmem:[#allocation4 + $0x44] ss:$8 sps:$4 sm:$0xff]  }
  0xb5   : > { %1087 = vmatpush1.bf16.msra.mxu1 %v2641_v63  ;;  %v2701_v63 = vld [vmem:[#allocation4 + $0x24] ss:$8 sps:$4 sm:$0xff]  }
  0xb6   : > { %834 = vmatmul.mubr.bf16.vlgmr.msra.gmra.mrb[0].mxu0 %v2594_v54  ;;  %1088 = vmatprep.subr.bf16.mxu1 %v2642_v0  ;;  %v2684_v54 = vld [vmem:[#allocation2 + $0xd0] ss:$8 sps:$4 sm:$0xff]   ;;  %v2699_v0 = vld [vmem:[#allocation4 + $0x20] ss:$8 sps:$4 sm:$0xff]  }
  0xb7   : > { %1316 = vmatpush1.bf16.msra.mxu0 %v2645_v2  ;;  %v2702_v2 = vld [vmem:[#allocation4 + $0x30] ss:$8 sps:$4 sm:$0xff]  }
  0xb8   : > { %1317 = vmatprep.subr.bf16.mxu0 %v2650_v4  ;;  %v2705_v4 = vld [vmem:[#allocation4 + $0x40] ss:$8 sps:$4 sm:$0xff]  }
  0xb9   : > { %1089 = vmatpush1.bf16.msra.mxu1 %v2644_v1  ;;  %v2704_v1 = vld [vmem:[#allocation4 + $0x34] ss:$8 sps:$4 sm:$0xff]  }
  0xba   : > { %1584 = vmatprep.subr.bf16.mxu1 %v2695_v60  ;;  %v2758_v60 = vld [vmem:[#allocation6 + $0x54] ss:$8 sps:$4 sm:$0xff]  }
  0xbb   : > { %1318 = vmatpush1.bf16.msra.mxu0 %v2648_v5  ;;  %v2710_v5 = vld [vmem:[#allocation4 + $0x54] ss:$8 sps:$4 sm:$0xff]  }
  0xbc   : > { %1319 = vmatprep.subr.bf16.mxu0 %v2653_v6  ;;  %v2708_v6 = vld [vmem:[#allocation4 + $0x50] ss:$8 sps:$4 sm:$0xff]  }
  0xbf   : > { %1320 = vmatpush1.bf16.msra.mxu0 %v2651_v7  ;;  %v2713_v7 = vld [vmem:[#allocation4 + $0x64] ss:$8 sps:$4 sm:$0xff]  }
  0xc0   : > { %1321 = vmatprep.subr.bf16.mxu0 %v2656_v8  ;;  %v2711_v8 = vld [vmem:[#allocation4 + $0x60] ss:$8 sps:$4 sm:$0xff]  }
  0xc3   : > { %1322 = vmatpush1.bf16.msra.mxu0 %v2654_v9  ;;  %v2716_v9 = vld [vmem:[#allocation4 + $0x74] ss:$8 sps:$4 sm:$0xff]  }
  0xc4   : > { %1323 = vmatprep.subr.bf16.mxu0 %v2659_v10  ;;  %v2714_v10 = vld [vmem:[#allocation4 + $0x70] ss:$8 sps:$4 sm:$0xff]  }
  0xc7   : > { %1324 = vmatpush1.bf16.msra.mxu0 %v2657_v11  ;;  %v2719_v11 = vld [vmem:[#allocation4 + $0x84] ss:$8 sps:$4 sm:$0xff]  }
  0xc8   : > { %1325 = vmatprep.subr.bf16.mxu0 %v2662_v12  ;;  %v2717_v12 = vld [vmem:[#allocation4 + $0x80] ss:$8 sps:$4 sm:$0xff]  }
  0xcb   : > { %1326 = vmatpush1.bf16.msra.mxu0 %v2660_v13  ;;  %v2722_v13 = vld [vmem:[#allocation4 + $0x94] ss:$8 sps:$4 sm:$0xff]  }
  0xcc   : > { %1327 = vmatprep.subr.bf16.mxu0 %v2665_v14  ;;  %v2720_v14 = vld [vmem:[#allocation4 + $0x90] ss:$8 sps:$4 sm:$0xff]  }
  0xcf   : > { %1328 = vmatpush1.bf16.msra.mxu0 %v2663_v15  ;;  %v2725_v15 = vld [vmem:[#allocation4 + $0xa4] ss:$8 sps:$4 sm:$0xff]  }
  0xd0   : > { %1329 = vmatprep.subr.bf16.mxu0 %v2668_v16  ;;  %v2723_v16 = vld [vmem:[#allocation4 + $0xa0] ss:$8 sps:$4 sm:$0xff]  }
  0xd3   : > { %1330 = vmatpush1.bf16.msra.mxu0 %v2666_v17  ;;  %v2728_v17 = vld [vmem:[#allocation4 + $0xb4] ss:$8 sps:$4 sm:$0xff]  }
  0xd4   : > { %1331 = vmatprep.subr.bf16.mxu0 %v2671_v18  ;;  %v2726_v18 = vld [vmem:[#allocation4 + $0xb0] ss:$8 sps:$4 sm:$0xff]  }
  0xd7   : > { %1332 = vmatpush1.bf16.msra.mxu0 %v2669_v19  ;;  %v2731_v19 = vld [vmem:[#allocation4 + $0xc4] ss:$8 sps:$4 sm:$0xff]  }
  0xd8   : > { %1333 = vmatprep.subr.bf16.mxu0 %v2674_v20  ;;  %v2729_v20 = vld [vmem:[#allocation4 + $0xc0] ss:$8 sps:$4 sm:$0xff]  }
  0xdb   : > { %1334 = vmatpush1.bf16.msra.mxu0 %v2672_v21  ;;  %v2734_v21 = vld [vmem:[#allocation4 + $0xd4] ss:$8 sps:$4 sm:$0xff]  }
  0xdc   : > { %1335 = vmatprep.subr.bf16.mxu0 %v2677_v22  ;;  %v2732_v22 = vld [vmem:[#allocation4 + $0xd0] ss:$8 sps:$4 sm:$0xff]  }
  0xdf   : > { %1336 = vmatpush1.bf16.msra.mxu0 %v2675_v23  ;;  %v886_v23 = vld [vmem:[%s3458_s6] sm:$0x3] }
  0xe0   : > { %1337 = vmatprep.subr.bf16.mxu0 %v2680_v24  ;;  %v891_v24 = vrot.slane %v886_v23, %v3408_v30 }
  0xe3   : > { %1338 = vmatpush1.bf16.msra.mxu0 %v2678_v25  ;;  %v895_v25 = vrot.slane %v886_v23, %v3413_v32 }
  0xe4   : > { %1339 = vmatprep.subr.bf16.mxu0 %v2683_v26 }
  0xe7   : > { %1340 = vmatpush1.bf16.msra.mxu0 %v2681_v27 }
  0xe8   : > { %1341 = vmatprep.subr.bf16.mxu0 %v2686_v53  ;;  %v2744_v53 = vld [vmem:[#allocation6 + $0x10] ss:$8 sps:$4 sm:$0xff]  }
  0xeb   : > { %1342 = vmatpush1.bf16.msra.mxu0 %v2684_v54  ;;  %v2749_v54 = vld [vmem:[#allocation6 + $0x24] ss:$8 sps:$4 sm:$0xff]  }
  0xec   : > { %1343 = vmatprep.subr.bf16.mxu0 %v2689_v55  ;;  %v2747_v55 = vld [vmem:[#allocation6 + $0x20] ss:$8 sps:$4 sm:$0xff]  }
  0xef   : > { %1344 = vmatpush1.bf16.msra.mxu0 %v2687_v56  ;;  %v2752_v56 = vld [vmem:[#allocation6 + $0x34] ss:$8 sps:$4 sm:$0xff]  }
  0xf0   : > { %1345 = vmatprep.subr.bf16.mxu0 %v2692_v57  ;;  %v2750_v57 = vld [vmem:[#allocation6 + $0x30] ss:$8 sps:$4 sm:$0xff]  }
  0xf3   : > { %1346 = vmatpush1.bf16.msra.mxu0 %v2690_v58  ;;  %v2755_v58 = vld [vmem:[#allocation6 + $0x44] ss:$8 sps:$4 sm:$0xff]  }
 0x189   : > { %v835_v35 = vpop.f32.mrb[0].mxu0 }
 0x18a   : > { %v836_v36 = vadd.f32 %v835_v35, %v624_v33  ;;  %v837_v37 = vpop.f32.mrb[1].mxu0 }
 0x18b   : > { %v838_v38 = vadd.f32 %v837_v37, %v628_v34  ;;  %v839_v39 = vpop.f32.mrb[2].mxu0 }
 0x18c   : > { %v844_v40 = vmul.f32 0.01, %v836_v36  ;;  %v840_v41 = vadd.f32 %v839_v39, %v624_v33  ;;  %v841_v42 = vpop.f32.mrb[3].mxu0 }
 0x18d   : > { %v845_v43 = vmul.f32 0.01, %v838_v38  ;;  %v842_v44 = vadd.f32 %v841_v42, %v628_v34 }
 0x18e   : > { %v846_v45 = vmul.f32 0.01, %v840_v41  ;;  %v848_v47 = vmax.f32 %v836_v36, %v844_v40 }
 0x18f   : > { %v847_v46 = vmul.f32 0.01, %v842_v44  ;;  %v849_v49 = vmax.f32 %v838_v38, %v845_v43 }
 0x190   : > { %v850_v48 = vmax.f32 %v840_v41, %v846_v45 }
 0x191   : > { %v851_v50 = vmax.f32 %v842_v44, %v847_v46  ;;  %v2737_v46 = vld [vmem:[#allocation4 + $0xe4] ss:$8 sps:$4 sm:$0xff]  }
 0x192   : > { %v852_v51 = vpack.c.bf16 %v850_v48, %v848_v47  ;;  %v2735_v47 = vld [vmem:[#allocation4 + $0xe0] ss:$8 sps:$4 sm:$0xff]   ;;  %v2740_v48 = vld [vmem:[#allocation4 + $0xf4] ss:$8 sps:$4 sm:$0xff]  }
 0x193   : > { %v853_v52 = vpack.c.bf16 %v851_v50, %v849_v49  ;;  %v2738_v49 = vld [vmem:[#allocation4 + $0xf0] ss:$8 sps:$4 sm:$0xff]   ;;  %v2741_v50 = vld [vmem:[#allocation6] ss:$8 sps:$4 sm:$0xff]  }
 0x195   : > { %1090 = vmatprep.mubr.bf16.mxu1 %v853_v52  ;;  %v2746_v52 = vld [vmem:[#allocation6 + $0x14] ss:$8 sps:$4 sm:$0xff]  }
 0x196   : > { %1091 = vmatmul.mubr.bf16.vlgmr.msra.gmra.mrb[0].mxu1 %v852_v51  ;;  %v2743_v51 = vld [vmem:[#allocation6 + $0x4] ss:$8 sps:$4 sm:$0xff]  }
 0x197   : > { %1585 = vmatpush1.bf16.msra.mxu1 %v2693_v59  ;;  %1841 = vmatprep.subr.bf16.mxu0 %v2743_v51  ;;  %v2753_v59 = vld [vmem:[#allocation6 + $0x40] ss:$8 sps:$4 sm:$0xff]   ;;  %v2788_v51 = vld [vmem:[#allocation6 + $0xf4] ss:$8 sps:$4 sm:$0xff]  }
 0x198   : > { %1586 = vmatprep.subr.bf16.mxu1 %v2698_v61  ;;  %v2756_v61 = vld [vmem:[#allocation6 + $0x50] ss:$8 sps:$4 sm:$0xff]  }
 0x19b   : > { %1587 = vmatpush1.bf16.msra.mxu1 %v2696_v62  ;;  %v2761_v62 = vld [vmem:[#allocation6 + $0x64] ss:$8 sps:$4 sm:$0xff]  }
 0x19c   : > { %1588 = vmatprep.subr.bf16.mxu1 %v2701_v63  ;;  %v2759_v63 = vld [vmem:[#allocation6 + $0x60] ss:$8 sps:$4 sm:$0xff]  }
 0x19f   : > { %1589 = vmatpush1.bf16.msra.mxu1 %v2699_v0  ;;  %v2764_v0 = vld [vmem:[#allocation6 + $0x74] ss:$8 sps:$4 sm:$0xff]  }
 0x1a0   : > { %1590 = vmatprep.subr.bf16.mxu1 %v2704_v1  ;;  %v2762_v1 = vld [vmem:[#allocation6 + $0x70] ss:$8 sps:$4 sm:$0xff]  }
 0x1a3   : > { %1591 = vmatpush1.bf16.msra.mxu1 %v2702_v2  ;;  %v2767_v2 = vld [vmem:[#allocation6 + $0x84] ss:$8 sps:$4 sm:$0xff]  }
 0x1a4   : > { %1592 = vmatprep.subr.bf16.mxu1 %v2707_v3  ;;  %v2765_v3 = vld [vmem:[#allocation6 + $0x80] ss:$8 sps:$4 sm:$0xff]  }
 0x1a7   : > { %1593 = vmatpush1.bf16.msra.mxu1 %v2705_v4  ;;  %v2770_v4 = vld [vmem:[#allocation6 + $0x94] ss:$8 sps:$4 sm:$0xff]  }
 0x1a8   : > { %1594 = vmatprep.subr.bf16.mxu1 %v2710_v5  ;;  %v2768_v5 = vld [vmem:[#allocation6 + $0x90] ss:$8 sps:$4 sm:$0xff]  }
 0x1ab   : > { %1595 = vmatpush1.bf16.msra.mxu1 %v2708_v6  ;;  %v2773_v6 = vld [vmem:[#allocation6 + $0xa4] ss:$8 sps:$4 sm:$0xff]  }
 0x1ac   : > { %1596 = vmatprep.subr.bf16.mxu1 %v2713_v7  ;;  %v2771_v7 = vld [vmem:[#allocation6 + $0xa0] ss:$8 sps:$4 sm:$0xff]  }
 0x1af   : > { %1597 = vmatpush1.bf16.msra.mxu1 %v2711_v8  ;;  %v2776_v8 = vld [vmem:[#allocation6 + $0xb4] ss:$8 sps:$4 sm:$0xff]  }
 0x1b0   : > { %1598 = vmatprep.subr.bf16.mxu1 %v2716_v9  ;;  %v2774_v9 = vld [vmem:[#allocation6 + $0xb0] ss:$8 sps:$4 sm:$0xff]  }
 0x1b3   : > { %1599 = vmatpush1.bf16.msra.mxu1 %v2714_v10  ;;  %v2779_v10 = vld [vmem:[#allocation6 + $0xc4] ss:$8 sps:$4 sm:$0xff]  }
 0x1b4   : > { %1600 = vmatprep.subr.bf16.mxu1 %v2719_v11  ;;  %v2777_v11 = vld [vmem:[#allocation6 + $0xc0] ss:$8 sps:$4 sm:$0xff]  }
 0x1b7   : > { %1601 = vmatpush1.bf16.msra.mxu1 %v2717_v12  ;;  %v1143_v12 = vld [vmem:[%s3482_s27] sm:$0x3] }
 0x1b8   : > { %1602 = vmatprep.subr.bf16.mxu1 %v2722_v13  ;;  %v1358_v13 = vld [vmem:[%s562_s23] sm:$0xff] }
 0x1b9   : > { %v1361_v23 = vunpack.c.h.bf16 %v1358_v13 }
 0x1bb   : > { %1603 = vmatpush1.bf16.msra.mxu1 %v2720_v14  ;;  %v1364_v14 = vld [vmem:[%s569_s16] sm:$0xff] }
 0x1bc   : > { %1604 = vmatprep.subr.bf16.mxu1 %v2725_v15  ;;  %v1359_v15 = vld [vmem:[%s562_s23 + $0x8] sm:$0xff] }
 0x1bf   : > { %1605 = vmatpush1.bf16.msra.mxu1 %v2723_v16  ;;  %v1365_v16 = vld [vmem:[%s569_s16 + $0x8] sm:$0xff] }
 0x1c0   : > { %1606 = vmatprep.subr.bf16.mxu1 %v2728_v17  ;;  %v1148_v17 = vrot.slane %v1143_v12, %v3408_v30 }
 0x1c3   : > { %1607 = vmatpush1.bf16.msra.mxu1 %v2726_v18  ;;  %v1360_v18 = vunpack.c.l.bf16 %v1358_v13  ;;  %v2827_v13 = vld [vmem:[#allocation7 + $0xc4] ss:$8 sps:$4 sm:$0xff]  }
 0x1c4   : > { %1608 = vmatprep.subr.bf16.mxu1 %v2731_v19  ;;  %v1366_v19 = vunpack.c.l.bf16 %v1364_v14 }
 0x1c7   : > { %1609 = vmatpush1.bf16.msra.mxu1 %v2729_v20  ;;  %v1152_v20 = vrot.slane %v1143_v12, %v3413_v32  ;;  %v2822_v12 = vld [vmem:[#allocation7 + $0xb0] ss:$8 sps:$4 sm:$0xff]  }
 0x1c8   : > { %1610 = vmatprep.subr.bf16.mxu1 %v2734_v21  ;;  %v1362_v21 = vunpack.c.l.bf16 %v1359_v15 }
 0x1cb   : > { %1611 = vmatpush1.bf16.msra.mxu1 %v2732_v22  ;;  %v1368_v22 = vunpack.c.l.bf16 %v1365_v16 }
 0x1cc   : > { %1612 = vmatprep.subr.bf16.mxu1 %v2737_v46 }
 0x1cf   : > { %1613 = vmatpush1.bf16.msra.mxu1 %v2735_v47  ;;  %v2782_v47 = vld [vmem:[#allocation6 + $0xd4] ss:$8 sps:$4 sm:$0xff]  }
 0x1d0   : > { %1614 = vmatprep.subr.bf16.mxu1 %v2740_v48  ;;  %v2780_v48 = vld [vmem:[#allocation6 + $0xd0] ss:$8 sps:$4 sm:$0xff]  }
 0x1d3   : > { %1615 = vmatpush1.bf16.msra.mxu1 %v2738_v49  ;;  %v2785_v49 = vld [vmem:[#allocation6 + $0xe4] ss:$8 sps:$4 sm:$0xff]  }
 0x269   : > { %v1092_v26 = vpop.f32.mrb[0].mxu1 }
 0x26a   : > { %v1093_v27 = vadd.f32 %v1092_v26, %v891_v24  ;;  %v1094_v28 = vpop.f32.mrb[1].mxu1  ;;  %v1369_v26 = vunpack.c.h.bf16 %v1365_v16 }
 0x26b   : > { %v1095_v29 = vadd.f32 %v1094_v28, %v895_v25  ;;  %v1096_v31 = vpop.f32.mrb[2].mxu1 }
 0x26c   : > { %v1101_v33 = vmul.f32 0.01, %v1093_v27  ;;  %v1097_v34 = vadd.f32 %v1096_v31, %v891_v24  ;;  %v1098_v35 = vpop.f32.mrb[3].mxu1  ;;  %v1367_v24 = vunpack.c.h.bf16 %v1364_v14  ;;  %v2825_v14 = vld [vmem:[#allocation7 + $0xc0] ss:$8 sps:$4 sm:$0xff]  }
 0x26d   : > { %v1102_v36 = vmul.f32 0.01, %v1095_v29  ;;  %v1099_v37 = vadd.f32 %v1098_v35, %v895_v25  ;;  %v1363_v25 = vunpack.c.h.bf16 %v1359_v15  ;;  %v1412_v15 = vld [vmem:[%s3483_s15] sm:$0x3] }
 0x26e   : > { %v1103_v38 = vmul.f32 0.01, %v1097_v34  ;;  %v1105_v40 = vmax.f32 %v1093_v27, %v1101_v33  ;;  %v1372_v33 = vadd.f32 %v1368_v22, %v1362_v21  ;;  %v1371_v35 = vadd.f32 %v1367_v24, %v1361_v23 }
 0x26f   : > { %v1104_v39 = vmul.f32 0.01, %v1099_v37  ;;  %v1106_v42 = vmax.f32 %v1095_v29, %v1102_v36  ;;  %v1370_v29 = vadd.f32 %v1366_v19, %v1360_v18  ;;  %v1417_v16 = vrot.slane %v1412_v15, %v3408_v30 }
 0x270   : > { %v1107_v41 = vmax.f32 %v1097_v34, %v1103_v38 }
 0x271   : > { %v1108_v43 = vmax.f32 %v1099_v37, %v1104_v39  ;;  %v1373_v37 = vadd.f32 %v1369_v26, %v1363_v25 }
 0x272   : > { %v1109_v44 = vpack.c.bf16 %v1107_v41, %v1105_v40 }
 0x273   : > { %v1110_v45 = vpack.c.bf16 %v1108_v43, %v1106_v42 }
 0x275   : > { %1347 = vmatprep.mubr.bf16.mxu0 %v1110_v45 }
 0x276   : > { %1348 = vmatmul.mubr.bf16.vlgmr.msra.gmra.mrb[4].mxu0 %v1109_v44 }
 0x277   : > { %1842 = vmatpush1.bf16.msra.mxu0 %v2741_v50  ;;  %v2783_v50 = vld [vmem:[#allocation6 + $0xe0] ss:$8 sps:$4 sm:$0xff]  }
 0x278   : > { %1843 = vmatprep.subr.bf16.mxu0 %v2746_v52  ;;  %v2786_v52 = vld [vmem:[#allocation6 + $0xf0] ss:$8 sps:$4 sm:$0xff]  }
 0x27b   : > { %1844 = vmatpush1.bf16.msra.mxu0 %v2744_v53  ;;  %v2789_v53 = vld [vmem:[#allocation7] ss:$8 sps:$4 sm:$0xff]  }
 0x27c   : > { %1845 = vmatprep.subr.bf16.mxu0 %v2749_v54  ;;  %v2791_v54 = vld [vmem:[#allocation7 + $0x4] ss:$8 sps:$4 sm:$0xff]  }
 0x27d   : > { %2086 = vmatprep.subr.bf16.mxu1 %v2791_v54 }
 0x27f   : > { %1846 = vmatpush1.bf16.msra.mxu0 %v2747_v55  ;;  %v2794_v55 = vld [vmem:[#allocation7 + $0x14] ss:$8 sps:$4 sm:$0xff]  }
 0x280   : > { %1847 = vmatprep.subr.bf16.mxu0 %v2752_v56  ;;  %v2792_v56 = vld [vmem:[#allocation7 + $0x10] ss:$8 sps:$4 sm:$0xff]  }
 0x283   : > { %1848 = vmatpush1.bf16.msra.mxu0 %v2750_v57  ;;  %v2797_v57 = vld [vmem:[#allocation7 + $0x24] ss:$8 sps:$4 sm:$0xff]  }
 0x284   : > { %1849 = vmatprep.subr.bf16.mxu0 %v2755_v58  ;;  %v2795_v58 = vld [vmem:[#allocation7 + $0x20] ss:$8 sps:$4 sm:$0xff]  }
 0x287   : > { %1850 = vmatpush1.bf16.msra.mxu0 %v2753_v59  ;;  %v2800_v59 = vld [vmem:[#allocation7 + $0x34] ss:$8 sps:$4 sm:$0xff]  }
 0x288   : > { %1851 = vmatprep.subr.bf16.mxu0 %v2758_v60  ;;  %v2798_v60 = vld [vmem:[#allocation7 + $0x30] ss:$8 sps:$4 sm:$0xff]  }
 0x28b   : > { %1852 = vmatpush1.bf16.msra.mxu0 %v2756_v61  ;;  %v2803_v61 = vld [vmem:[#allocation7 + $0x44] ss:$8 sps:$4 sm:$0xff]  }
 0x28c   : > { %1853 = vmatprep.subr.bf16.mxu0 %v2761_v62  ;;  %v2801_v62 = vld [vmem:[#allocation7 + $0x40] ss:$8 sps:$4 sm:$0xff]  }
 0x28f   : > { %1854 = vmatpush1.bf16.msra.mxu0 %v2759_v63  ;;  %v2806_v63 = vld [vmem:[#allocation7 + $0x54] ss:$8 sps:$4 sm:$0xff]  }
 0x290   : > { %1855 = vmatprep.subr.bf16.mxu0 %v2764_v0  ;;  %v2804_v0 = vld [vmem:[#allocation7 + $0x50] ss:$8 sps:$4 sm:$0xff]  }
 0x293   : > { %1856 = vmatpush1.bf16.msra.mxu0 %v2762_v1  ;;  %v2809_v1 = vld [vmem:[#allocation7 + $0x64] ss:$8 sps:$4 sm:$0xff]  }
 0x294   : > { %1857 = vmatprep.subr.bf16.mxu0 %v2767_v2  ;;  %v2807_v2 = vld [vmem:[#allocation7 + $0x60] ss:$8 sps:$4 sm:$0xff]  }
 0x297   : > { %1858 = vmatpush1.bf16.msra.mxu0 %v2765_v3  ;;  %v2812_v3 = vld [vmem:[#allocation7 + $0x74] ss:$8 sps:$4 sm:$0xff]  }
 0x298   : > { %1859 = vmatprep.subr.bf16.mxu0 %v2770_v4  ;;  %v2810_v4 = vld [vmem:[#allocation7 + $0x70] ss:$8 sps:$4 sm:$0xff]  }
 0x29b   : > { %1860 = vmatpush1.bf16.msra.mxu0 %v2768_v5  ;;  %v2815_v5 = vld [vmem:[#allocation7 + $0x84] ss:$8 sps:$4 sm:$0xff]  }
 0x29c   : > { %1861 = vmatprep.subr.bf16.mxu0 %v2773_v6  ;;  %v2813_v6 = vld [vmem:[#allocation7 + $0x80] ss:$8 sps:$4 sm:$0xff]  }
 0x29f   : > { %1862 = vmatpush1.bf16.msra.mxu0 %v2771_v7  ;;  %v2818_v7 = vld [vmem:[#allocation7 + $0x94] ss:$8 sps:$4 sm:$0xff]  }
 0x2a0   : > { %1863 = vmatprep.subr.bf16.mxu0 %v2776_v8  ;;  %v2816_v8 = vld [vmem:[#allocation7 + $0x90] ss:$8 sps:$4 sm:$0xff]  }
 0x2a3   : > { %1864 = vmatpush1.bf16.msra.mxu0 %v2774_v9  ;;  %v2821_v9 = vld [vmem:[#allocation7 + $0xa4] ss:$8 sps:$4 sm:$0xff]  }
 0x2a4   : > { %1865 = vmatprep.subr.bf16.mxu0 %v2779_v10  ;;  %v2819_v10 = vld [vmem:[#allocation7 + $0xa0] ss:$8 sps:$4 sm:$0xff]  }
 0x2a7   : > { %1866 = vmatpush1.bf16.msra.mxu0 %v2777_v11  ;;  %v2824_v11 = vld [vmem:[#allocation7 + $0xb4] ss:$8 sps:$4 sm:$0xff]  }
 0x2a8   : > { %1867 = vmatprep.subr.bf16.mxu0 %v2782_v47 }
 0x2ab   : > { %1868 = vmatpush1.bf16.msra.mxu0 %v2780_v48 }
 0x2ac   : > { %1869 = vmatprep.subr.bf16.mxu0 %v2785_v49 }
 0x2af   : > { %1870 = vmatpush1.bf16.msra.mxu0 %v2783_v50 }
 0x2b0   : > { %1871 = vmatprep.subr.bf16.mxu0 %v2788_v51 }
 0x2b3   : > { %1872 = vmatpush1.bf16.msra.mxu0 %v2786_v52 }
 0x349   : > { %v1349_v27 = vpop.f32.mrb[4].mxu0 }
 0x34a   : > { %v1350_v28 = vadd.f32 %v1349_v27, %v1148_v17  ;;  %v1351_v31 = vpop.f32.mrb[5].mxu0 }
 0x34b   : > { %v1352_v34 = vadd.f32 %v1351_v31, %v1152_v20  ;;  %v1353_v36 = vpop.f32.mrb[6].mxu0 }
 0x34c   : > { %v1354_v38 = vadd.f32 %v1353_v36, %v1148_v17  ;;  %v1355_v39 = vpop.f32.mrb[7].mxu0  ;;  %v1374_v41 = vadd.f32 %v1370_v29, %v1350_v28  ;;  %v1421_v17 = vrot.slane %v1412_v15, %v3413_v32 }
 0x34d   : > { %v1356_v40 = vadd.f32 %v1355_v39, %v1152_v20  ;;  %v1375_v43 = vadd.f32 %v1371_v35, %v1352_v34  ;;  %v2828_v39 = vld [vmem:[#allocation7 + $0xd0] ss:$8 sps:$4 sm:$0xff]  }
 0x34e   : > { %v1376_v42 = vadd.f32 %v1372_v33, %v1354_v38  ;;  %v2830_v38 = vld [vmem:[#allocation7 + $0xd4] ss:$8 sps:$4 sm:$0xff]  }
 0x34f   : > { %v1377_v44 = vadd.f32 %v1373_v37, %v1356_v40  ;;  %v2833_v40 = vld [vmem:[#allocation7 + $0xe4] ss:$8 sps:$4 sm:$0xff]  }
 0x350   : > { %v1378_v45 = vpack.c.bf16 %v1376_v42, %v1374_v41  ;;  %v2831_v41 = vld [vmem:[#allocation7 + $0xe0] ss:$8 sps:$4 sm:$0xff]   ;;  %v2836_v42 = vld [vmem:[#allocation7 + $0xf4] ss:$8 sps:$4 sm:$0xff]  }
 0x351   : > { %v1379_v46 = vpack.c.bf16 %v1377_v44, %v1375_v43  ;;  %v2834_v43 = vld [vmem:[#allocation7 + $0xf0] ss:$8 sps:$4 sm:$0xff]   ;;  %v1669_v44 = vld [vmem:[%s3484_s19] sm:$0x3] }
 0x353   : > { %1616 = vmatprep.mubr.bf16.mxu1 %v1379_v46  ;;  %v1678_v46 = vrot.slane %v1669_v44, %v3413_v32 }
 0x354   : > { %1617 = vmatmul.mubr.bf16.vlgmr.msra.gmra.mrb[4].mxu1 %v1378_v45  ;;  %v1674_v45 = vrot.slane %v1669_v44, %v3408_v30 }
 0x355   : > { %2087 = vmatpush1.bf16.msra.mxu1 %v2789_v53 }
 0x356   : > { %2088 = vmatprep.subr.bf16.mxu1 %v2794_v55 }
 0x359   : > { %2089 = vmatpush1.bf16.msra.mxu1 %v2792_v56 }
 0x35a   : > { %2090 = vmatprep.subr.bf16.mxu1 %v2797_v57 }
 0x35d   : > { %2091 = vmatpush1.bf16.msra.mxu1 %v2795_v58 }
 0x35e   : > { %2092 = vmatprep.subr.bf16.mxu1 %v2800_v59 }
 0x361   : > { %2093 = vmatpush1.bf16.msra.mxu1 %v2798_v60 }
 0x362   : > { %2094 = vmatprep.subr.bf16.mxu1 %v2803_v61 }
 0x365   : > { %2095 = vmatpush1.bf16.msra.mxu1 %v2801_v62 }
 0x366   : > { %2096 = vmatprep.subr.bf16.mxu1 %v2806_v63 }
 0x369   : > { %2097 = vmatpush1.bf16.msra.mxu1 %v2804_v0 }
 0x36a   : > { %2098 = vmatprep.subr.bf16.mxu1 %v2809_v1 }
 0x36d   : > { %2099 = vmatpush1.bf16.msra.mxu1 %v2807_v2 }
 0x36e   : > { %2100 = vmatprep.subr.bf16.mxu1 %v2812_v3 }
 0x371   : > { %2101 = vmatpush1.bf16.msra.mxu1 %v2810_v4 }
 0x372   : > { %2102 = vmatprep.subr.bf16.mxu1 %v2815_v5 }
 0x375   : > { %2103 = vmatpush1.bf16.msra.mxu1 %v2813_v6 }
 0x376   : > { %2104 = vmatprep.subr.bf16.mxu1 %v2818_v7 }
 0x379   : > { %2105 = vmatpush1.bf16.msra.mxu1 %v2816_v8 }
 0x37a   : > { %2106 = vmatprep.subr.bf16.mxu1 %v2821_v9 }
 0x37d   : > { %2107 = vmatpush1.bf16.msra.mxu1 %v2819_v10 }
 0x37e   : > { %2108 = vmatprep.subr.bf16.mxu1 %v2824_v11 }
 0x381   : > { %2109 = vmatpush1.bf16.msra.mxu1 %v2822_v12 }
 0x382   : > { %2110 = vmatprep.subr.bf16.mxu1 %v2827_v13 }
 0x385   : > { %2111 = vmatpush1.bf16.msra.mxu1 %v2825_v14 }
 0x386   : > { %2112 = vmatprep.subr.bf16.mxu1 %v2830_v38 }
 0x389   : > { %2113 = vmatpush1.bf16.msra.mxu1 %v2828_v39 }
 0x38a   : > { %2114 = vmatprep.subr.bf16.mxu1 %v2833_v40 }
 0x38d   : > { %2115 = vmatpush1.bf16.msra.mxu1 %v2831_v41 }
 0x38e   : > { %2116 = vmatprep.subr.bf16.mxu1 %v2836_v42 }
 0x391   : > { %2117 = vmatpush1.bf16.msra.mxu1 %v2834_v43 }
 0x427   : > { %v1618_v18 = vpop.f32.mrb[4].mxu1 }
 0x428   : > { %v1619_v19 = vadd.f32 %v1618_v18, %v1417_v16  ;;  %v1620_v20 = vpop.f32.mrb[5].mxu1 }
 0x429   : > { %v1621_v21 = vadd.f32 %v1620_v20, %v1421_v17  ;;  %v1622_v22 = vpop.f32.mrb[6].mxu1 }
 0x42a   : > { %v1627_v23 = vmul.f32 0.01, %v1619_v19  ;;  %v1623_v24 = vadd.f32 %v1622_v22, %v1417_v16  ;;  %v1624_v25 = vpop.f32.mrb[7].mxu1 }
 0x42b   : > { %v1628_v26 = vmul.f32 0.01, %v1621_v21  ;;  %v1625_v27 = vadd.f32 %v1624_v25, %v1421_v17 }
 0x42c   : > { %v1629_v28 = vmul.f32 0.01, %v1623_v24  ;;  %v1631_v31 = vmax.f32 %v1619_v19, %v1627_v23 }
 0x42d   : > { %v1630_v29 = vmul.f32 0.01, %v1625_v27  ;;  %v1632_v34 = vmax.f32 %v1621_v21, %v1628_v26 }
 0x42e   : > { %v1633_v33 = vmax.f32 %v1623_v24, %v1629_v28 }
 0x42f   : > { %v1634_v35 = vmax.f32 %v1625_v27, %v1630_v29 }
 0x430   : > { %v1635_v36 = vpack.c.bf16 %v1633_v33, %v1631_v31 }
 0x431   : > { %v1636_v37 = vpack.c.bf16 %v1634_v35, %v1632_v34 }
 0x433   : > { %1873 = vmatprep.mubr.bf16.mxu0 %v1636_v37 }
 0x434   : > { %1874 = vmatmul.mubr.bf16.vlgmr.msra.gmra.mrb[8].mxu0 %v1635_v36 }
 0x507   : > { %v1875_v47 = vpop.f32.mrb[8].mxu0 }
 0x508   : > { %v1876_v48 = vadd.f32 %v1875_v47, %v1674_v45  ;;  %v1877_v49 = vpop.f32.mrb[9].mxu0 }
 0x509   : > { %v1878_v50 = vadd.f32 %v1877_v49, %v1678_v46  ;;  %v1879_v51 = vpop.f32.mrb[10].mxu0 }
 0x50a   : > { %v1884_v52 = vmul.f32 0.01, %v1876_v48  ;;  %v1880_v53 = vadd.f32 %v1879_v51, %v1674_v45  ;;  %v1881_v54 = vpop.f32.mrb[11].mxu0 }
 0x50b   : > { %v1885_v55 = vmul.f32 0.01, %v1878_v50  ;;  %v1882_v56 = vadd.f32 %v1881_v54, %v1678_v46 }
 0x50c   : > { %v1886_v57 = vmul.f32 0.01, %v1880_v53  ;;  %v1888_v59 = vmax.f32 %v1876_v48, %v1884_v52 }
 0x50d   : > { %v1887_v58 = vmul.f32 0.01, %v1882_v56  ;;  %v1889_v61 = vmax.f32 %v1878_v50, %v1885_v55 }
 0x50e   : > { %v1890_v60 = vmax.f32 %v1880_v53, %v1886_v57 }
 0x50f   : > { %v1891_v62 = vmax.f32 %v1882_v56, %v1887_v58 }
 0x510   : > { %v1892_v30 = vpack.c.bf16 %v1890_v60, %v1888_v59 }
 0x511   : > { %v1893_v63 = vpack.c.bf16 %v1891_v62, %v1889_v61 }
 0x513   : > { %2118 = vmatprep.mubr.bf16.mxu1 %v1893_v63 }
 0x514   : > { %2119 = vmatmul.mubr.bf16.vlgmr.msra.gmra.mrb[8].mxu1 %v1892_v30 }
 0x5e7   : > { %v2120_v32 = vpop.f32.mrb[8].mxu1 }
 0x5e8   : > { %v2122_v0 = vpop.f32.mrb[9].mxu1 }
 0x5e9   : > { %v2493_v1 = vpack.c.bf16 %v2122_v0, %v2120_v32  ;;  %v2124_v2 = vpop.f32.mrb[10].mxu1 }
 0x5ea   : > { %v2126_v3 = vpop.f32.mrb[11].mxu1 }
 0x5eb   : > { %2141 = vst [vmem:[%s583_s12] sm:$0xff] %v2493_v1  ;;  %v2494_v4 = vpack.c.bf16 %v2126_v3, %v2124_v2 }
 0x5ed   : > { %2142 = vst [vmem:[%s583_s12 + $0x8] sm:$0xff] %v2494_v4 }
 0x5ee PF: > { %s27_s29 = sadd.s32 1, %s2967_s29  }
 0x5ef   : > { %p24_p3 = scmp.ge.s32.totalorder %s27_s29, 5  }
 0x5f1   :  { %26 = sbr.rel (!%p24_p3) target bundleno = 8 (0x8), region = 129 }
 0x5f8   :  { %2167 = vsyncpa [#allocation3], 1 }
 0x5f9   :  { %2169 = vsyncpa [#allocation3 + $0x1], 1 }
 0x5fa   :  { %2170 = vsyncpa [#allocation5], 1 }
 0x5fb   :  { %2171 = vsyncpa [#allocation8], 1 }

</bundles_post_ra>
